<compile_context>
chip_gen: v5e
topology: v5e:2x2
jax: 0.10.0
libtpu: 0.0.40
codegen_flags: <defaults>
</compile_context>

<pallas_src>
import functools

import jax
import jax.numpy as jnp
from jax.experimental import pallas as pl
from jax.experimental.pallas import tpu as pltpu


_LANES = 128
# Per-buffer VMEM budget for one pipelined block (2 MiB).  Double-buffered
# input + output -> ~8 MiB of scoped VMEM per kernel, which fits the default
# scoped-VMEM limit on every generation (v5e 16 MiB, v6e 32 MiB, v7x 32 MiB
# scoped / 64 MiB physical) with no vmem_limit_bytes override, while the block
# is large enough that the ~0.35 us per-grid-step overhead is amortized and a
# streaming copy sits at the HBM roofline (measured tiled-copy fractions:
# 512-row tiles -> 85%, 1024+ -> 86%).  Default pipeline depth of 2 is enough
# at this block size, so no pl.Buffered override.
_BLOCK_BYTES = 2 * 1024 * 1024


def _copy_kernel(x_ref, o_ref):
    # Whole-tile, lane-dense copy: unmasked full-vreg loads/stores, no XLU
    # relayout, no per-row slicing, no compute.  Pure streaming HBM work.
    o_ref[...] = x_ref[...]


def _row_block(rows, padded_row_bytes):
    """Largest row-block that is a multiple of 8 and fits _BLOCK_BYTES."""
    max_rows = max(_BLOCK_BYTES // max(padded_row_bytes, 1), 8)
    max_rows = (max_rows // 8) * 8
    if rows <= max_rows:
        return rows          # full extent always satisfies the (8,128) rule
    return max(max_rows, 8)  # otherwise a multiple of 8


def _tiled_identity_copy(x2d):
    """Streaming identity copy of a 2-D view, blocked along the leading dim."""
    rows, cols = x2d.shape
    itemsize = jnp.dtype(x2d.dtype).itemsize
    padded_cols = pl.cdiv(cols, _LANES) * _LANES      # VMEM lane padding
    block_rows = _row_block(rows, padded_cols * itemsize)
    grid = (pl.cdiv(rows, block_rows),)
    return pl.pallas_call(
        _copy_kernel,
        out_shape=jax.ShapeDtypeStruct((rows, cols), x2d.dtype),
        grid=grid,
        in_specs=[pl.BlockSpec((block_rows, cols), lambda i: (i, 0))],
        out_specs=pl.BlockSpec((block_rows, cols), lambda i: (i, 0)),
        # Output bytes are bit-identical to input bytes: the alias lets the
        # store be in-place when the caller donates x into the jit.  Note the
        # alias alone does NOT elide the read+write HBM traffic of the copy;
        # without donation XLA also keeps a defensive copy of x.  The truly
        # traffic-free implementation is plain jnp.reshape (see module note).
        input_output_aliases={0: 0},
        compiler_params=pltpu.CompilerParams(
            # 1-D parallel grid: lets the row range shard across both
            # TensorCores on v7x, harmless elsewhere.
            dimension_semantics=("parallel",),
        ),
    )(x2d)


@functools.partial(jax.jit, static_argnames=("upscale_factor",))
def pixel_shuffle(x, upscale_factor=2):
    n, c, w = x.shape
    r = int(upscale_factor)
    assert c % r == 0, "channels must be divisible by upscale_factor"
    c_out = c // r
    w_new = w * r

    total = n * c * w
    if total % _LANES == 0:
        # Lane-dense fast path: view the whole tensor as (rows, 128) so every
        # store is an unmasked full-width vst, copy in large tiles, view back.
        # Both reshapes are free metadata ops on a contiguous array.
        rows = total // _LANES
        x2d = jnp.reshape(x, (rows, _LANES))
        y2d = _tiled_identity_copy(x2d)
        return jnp.reshape(y2d, (n, c_out, w_new))

    # Fallback (element count not a multiple of 128): copy through the
    # output's logical 2-D view, still tiled along the leading dim so VMEM
    # usage stays O(block) instead of O(array) -- no whole-array VMEM block.
    x2d = jnp.reshape(x, (n * c_out, w_new))
    y2d = _tiled_identity_copy(x2d)
    return jnp.reshape(y2d, (n, c_out, w_new))


if __name__ == "__main__":
    # Module has no learnable parameters; only the forward rearrangement.
    key = jax.random.PRNGKey(0)
    n, c, w = 2, 4, 16
    upscale_factor = 2

    x = jax.random.normal(key, (n, c, w), dtype=jnp.float32)

    out = pixel_shuffle(x, upscale_factor=upscale_factor)
    out = jax.block_until_ready(out)

    # Reference: the exact PyTorch semantics (a contiguous reshape).
    ref = jnp.reshape(x, (n, c // upscale_factor, w * upscale_factor))

    assert out.shape == (n, c // upscale_factor, w * upscale_factor), out.shape
    assert out.dtype == x.dtype
    assert jnp.array_equal(out, ref), "mismatch vs reshape reference"

    print("KERNEL_OK")
</pallas_src>

<mosaic_0001>
module attributes {stable_mosaic.version = 11 : i64} {
  func.func @_copy_kernel(%arg0: i32, %arg1: memref<1x128xf32, #tpu.memory_space<vmem>>, %arg2: memref<1x128xf32, #tpu.memory_space<vmem>>) attributes {dimension_semantics = [#tpu.dimension_semantics<parallel>], iteration_bounds = array<i64: 1>, scalar_prefetch = 0 : i64, scratch_operands = 0 : i64, tpu.core_type = #tpu.core_type<tc>, window_params = [{transform_indices = @transform_0, window_bounds = array<i64: 1, 128>}, {transform_indices = @transform_1, window_bounds = array<i64: 1, 128>}]} {
    %c0 = arith.constant 0 : index
    %c0_0 = arith.constant 0 : index
    %0 = vector.load %arg1[%c0, %c0_0] : memref<1x128xf32, #tpu.memory_space<vmem>>, vector<1x128xf32>
    %c0_1 = arith.constant 0 : index
    %c0_2 = arith.constant 0 : index
    %1 = vector.load %arg2[%c0_1, %c0_2] : memref<1x128xf32, #tpu.memory_space<vmem>>, vector<1x128xf32>
    tpu.vector_store %arg2[%c0_1, %c0_2], %0 {strides = array<i32>} : memref<1x128xf32, #tpu.memory_space<vmem>>, vector<1x128xf32>,
    return
  }
  func.func @transform_0(%arg0: i32) -> (i32, i32) {
    %c0_i32 = arith.constant 0 : i32
    %c0_i32_0 = arith.constant 0 : i32
    return %arg0, %c0_i32 : i32, i32
  }
  func.func @transform_1(%arg0: i32) -> (i32, i32) {
    %c0_i32 = arith.constant 0 : i32
    %c0_i32_0 = arith.constant 0 : i32
    return %arg0, %c0_i32 : i32, i32
  }
}

</mosaic_0001>

<bundles_post_ra>
// kernel: pixel_shuffle.1
= control target key start
LH: loop header
LB: loop body
LE: loop exit
PB: predicated region body
PF: predicated region fallthrough
CT: control target
= control target key end

     0   :  { %s30_s0 = inlined_call_operand.vmem [shape: f32[1,128], index: 0, kind: input, shape index: {}, may-alias: {0,1}]   ;;  %s31_s1 = inlined_call_operand.vmem [shape: f32[1,128], index: 1, kind: output, shape index: {}, may-alias: {0,1}]  }
   0x1   :  { %v8_v0 = vld [vmem:[%s30_s0] sm:$0x1] }
   0x2   :  { %9 = vst [vmem:[%s31_s1] sm:$0x1] %v8_v0 }

</bundles_post_ra>
